<compile_context>
chip_gen: v6e
topology: v6e:2x2x1
jax: 0.10.0
libtpu: 0.0.40
codegen_flags: <defaults>
</compile_context>

<pallas_src>
import functools

import jax
import jax.numpy as jnp
from jax import lax
from jax.experimental import pallas as pl
from jax.experimental.pallas import tpu as pltpu


def _embed_kernel(idx_ref, emb_ref, out_ref):
    """One grid step: embed a tile of TM tokens.

    idx_ref: (TM, 1) int32   -- token ids for this tile (VMEM; tiny block)
    emb_ref: (V, D) float32  -- full embedding table (VMEM, constant index_map,
                                so the pipeline does not re-copy it per step)
    out_ref: (TM, D) float32 -- gathered embeddings (lane-dense, D multiple of 128)
    """
    ids = idx_ref[...]                                       # (TM, 1) int32
    tm = ids.shape[0]
    vocab = emb_ref.shape[0]
    # One-hot selection matrix; the (TM,1)->(TM,V) compare is a cheap lane
    # broadcast, and the gather itself runs on the MXU.
    col = lax.broadcasted_iota(jnp.int32, (tm, vocab), 1)    # (TM, V)
    onehot = (ids == col).astype(emb_ref.dtype)              # (TM, V)
    out_ref[...] = jnp.dot(
        onehot, emb_ref[...], preferred_element_type=jnp.float32
    ).astype(out_ref.dtype)


@functools.partial(jax.jit, static_argnames=("tile_m",))
def embedder_forward(x, emb_table, *, tile_m=128):
    """Pallas equivalent of `nn.Embedding(vocab, emb_dim)(x)`.

    x:         (B, S) int32 token indices
    emb_table: (V, D) float32 embedding weights
    returns:   (B, S, D) float32
    """
    B, S = x.shape
    V, D = emb_table.shape

    n_tok = B * S
    n_pad = pl.cdiv(n_tok, tile_m) * tile_m

    idx_flat = x.reshape(n_tok).astype(jnp.int32)
    if n_pad != n_tok:
        # Pad with index 0; padded rows are sliced off below.
        idx_flat = jnp.pad(idx_flat, (0, n_pad - n_tok))
    idx_col = idx_flat.reshape(n_pad, 1)

    grid = (n_pad // tile_m,)

    # Rough VMEM budget: table (double-buffer worst case) + idx/out tiles,
    # with headroom.  Keeps compiling past the 16 MiB v5e scoped default.
    vmem_bytes = 2 * V * D * 4 + 4 * tile_m * D * 4 + 2 * tile_m * 4 + (4 << 20)
    vmem_bytes = min(max(vmem_bytes, 16 << 20), 32 << 20)

    out = pl.pallas_call(
        _embed_kernel,
        out_shape=jax.ShapeDtypeStruct((n_pad, D), emb_table.dtype),
        grid_spec=pltpu.PrefetchScalarGridSpec(
            num_scalar_prefetch=0,
            grid=grid,
            in_specs=[
                # (TM, 1): last dim equals the full array dim (1), first dim tiled.
                pl.BlockSpec((tile_m, 1), lambda i: (i, 0)),
                # Full embedding table resident in VMEM; constant block index so
                # it is only DMA'd once.
                pl.BlockSpec((V, D), lambda i: (0, 0)),
            ],
            out_specs=pl.BlockSpec((tile_m, D), lambda i: (i, 0)),
        ),
        compiler_params=pltpu.CompilerParams(
            # Token tiles are independent -> megacore sharding on v7x.
            dimension_semantics=("parallel",),
            vmem_limit_bytes=vmem_bytes,
        ),
    )(idx_col, emb_table)

    if n_pad != n_tok:
        out = out[:n_tok]
    return out.reshape(B, S, D)


if __name__ == "__main__":
    # Module config (small, consistent with Embedder(vocab_size, emb_dim)).
    vocab_size = 32
    emb_dim = 128
    B, S = 2, 8

    key = jax.random.PRNGKey(0)
    k_emb, k_idx = jax.random.split(key)

    # Deterministic parameter init (nn.Embedding default: N(0, 1)).
    emb_table = jax.random.normal(k_emb, (vocab_size, emb_dim), dtype=jnp.float32)

    # Deterministic example token ids.
    x = jax.random.randint(k_idx, (B, S), 0, vocab_size, dtype=jnp.int32)

    out = embedder_forward(x, emb_table)
    out = jax.block_until_ready(out)

    # Reference check against a plain gather (same semantics as nn.Embedding).
    ref = emb_table[x]
    assert out.shape == (B, S, emb_dim), out.shape
    assert jnp.allclose(out, ref), "mismatch vs reference gather"

    print("KERNEL_OK")
</pallas_src>

<mosaic_0001>
module attributes {stable_mosaic.version = 11 : i64} {
  func.func @_embed_kernel(%arg0: i32, %arg1: memref<128x1xi32, #tpu.memory_space<vmem>>, %arg2: memref<32x128xf32, #tpu.memory_space<vmem>>, %arg3: memref<128x128xf32, #tpu.memory_space<vmem>>) attributes {dimension_semantics = [#tpu.dimension_semantics<parallel>], iteration_bounds = array<i64: 1>, scalar_prefetch = 0 : i64, scratch_operands = 0 : i64, tpu.core_type = #tpu.core_type<tc>, window_params = [{transform_indices = @transform_0, window_bounds = array<i64: 128, 1>}, {pipeline_mode = #tpu.pipeline_mode<synchronous>, transform_indices = @transform_1, window_bounds = array<i64: 32, 128>}, {transform_indices = @transform_2, window_bounds = array<i64: 128, 128>}]} {
    %c0 = arith.constant 0 : index
    %c0_0 = arith.constant 0 : index
    %0 = vector.load %arg1[%c0, %c0_0] : memref<128x1xi32, #tpu.memory_space<vmem>>, vector<128x1xi32>
    %1 = tpu.iota {dimensions = array<i32: 1>} : vector<128x32xi32>
    %2 = vector.broadcast %0 : vector<128x1xi32> to vector<128x32xi32>
    %3 = arith.cmpi eq, %2, %1 : vector<128x32xi32>
    %4 = arith.extui %3 : vector<128x32xi1> to vector<128x32xi32>
    %5 = arith.sitofp %4 : vector<128x32xi32> to vector<128x32xf32>
    %c0_1 = arith.constant 0 : index
    %c0_2 = arith.constant 0 : index
    %6 = vector.load %arg2[%c0_1, %c0_2] : memref<32x128xf32, #tpu.memory_space<vmem>>, vector<32x128xf32>
    %cst = arith.constant dense<0.000000e+00> : vector<128x128xf32>
    %7 = tpu.matmul %5, %6, %cst {dimension_numbers = #tpu.dot_dimension_numbers<[1], [0], [0], [1], [0, 0, 1, 1], [], []>} : vector<128x32xf32>, vector<32x128xf32>, vector<128x128xf32> -> vector<128x128xf32>
    %c0_3 = arith.constant 0 : index
    %c0_4 = arith.constant 0 : index
    %8 = vector.load %arg3[%c0_3, %c0_4] : memref<128x128xf32, #tpu.memory_space<vmem>>, vector<128x128xf32>
    tpu.vector_store %arg3[%c0_3, %c0_4], %7 {strides = array<i32>} : memref<128x128xf32, #tpu.memory_space<vmem>>, vector<128x128xf32>,
    return
  }
  func.func @transform_0(%arg0: i32) -> (i32, i32) {
    %c0_i32 = arith.constant 0 : i32
    %c0_i32_0 = arith.constant 0 : i32
    return %arg0, %c0_i32 : i32, i32
  }
  func.func @transform_1(%arg0: i32) -> (i32, i32) {
    %c0_i32 = arith.constant 0 : i32
    %c0_i32_0 = arith.constant 0 : i32
    %c0_i32_1 = arith.constant 0 : i32
    return %c0_i32, %c0_i32_0 : i32, i32
  }
  func.func @transform_2(%arg0: i32) -> (i32, i32) {
    %c0_i32 = arith.constant 0 : i32
    %c0_i32_0 = arith.constant 0 : i32
    return %arg0, %c0_i32 : i32, i32
  }
}

</mosaic_0001>

<bundles_post_ra>
// kernel: embedder_forward.1
= control target key start
LH: loop header
LB: loop body
LE: loop exit
PB: predicated region body
PF: predicated region fallthrough
CT: control target
= control target key end

     0   :  { %v439_v0 = vmov 0   ;;  %v27_v21 = vlaneseq  ;;  %vm129_vm0 = vcmask 261120   ;;  %v440_v25 = vmov 0.0   ;;  %s598_s0 = inlined_call_operand.vmem [shape: s32[128,1], index: 0, kind: input, shape index: {}]   ;;  %s599_s1 = inlined_call_operand.vmem [shape: f32[32,128], index: 1, kind: input, shape index: {}]   ;;  %s600_s2 = inlined_call_operand.vmem [shape: f32[128,128], index: 2, kind: output, shape index: {}]  }
   0x1   :  { %438 = vset.pattern.permute.xlu1 %v439_v0  ;;  %437 = vset.pattern.permute.xlu0 %v439_v0  ;;  %v12_v1 = vld [vmem:[%s598_s0 + $0x8] sm:$0xff]  ;;  %v11_v2 = vld [vmem:[%s598_s0] sm:$0xff]  ;;  %v128_v5 = vld [vmem:[%s599_s1 + $0x18] sm:$0xff] }
   0x2   :  { %33 = vperm.xlu1 %438, %v12_v1   ;;  %30 = vperm.xlu0 %437, %v11_v2   ;;  %v20_v3 = vld [vmem:[%s598_s0 + $0x48] sm:$0xff]  ;;  %v19_v4 = vld [vmem:[%s598_s0 + $0x40] sm:$0xff]  ;;  %v127_v6 = vld [vmem:[%s599_s1 + $0x10] sm:$0xff]  ;;  %v516_v22 = vand.u32 127, %v27_v21 }
   0x3   :  { %v21_v7 = vld [vmem:[%s598_s0 + $0x50] sm:$0xff]  ;;  %395 = vmatprep.subr.mxu0 %v128_v5  ;;  %427 = vmatprep.subr.mxu1 %v128_v5  ;;  %v126_v9 = vld [vmem:[%s599_s1 + $0x8] sm:$0xff]  ;;  %v22_v10 = vld [vmem:[%s598_s0 + $0x58] sm:$0xff] }
   0x4   :  { %v13_v8 = vld [vmem:[%s598_s0 + $0x10] sm:$0xff]  ;;  %396 = vmatpush3.msra.mxu0 %v128_v5  ;;  %431 = vmatpush3.msra.mxu1 %v128_v5  ;;  %v14_v11 = vld [vmem:[%s598_s0 + $0x18] sm:$0xff]  ;;  %v125_v12 = vld [vmem:[%s599_s1] sm:$0xff] }
   0x5   :  { %397 = vmatprep.subr.mxu0 %v127_v6  ;;  %428 = vmatprep.subr.mxu1 %v127_v6  ;;  %v23_v13 = vld [vmem:[%s598_s0 + $0x60] sm:$0xff]  ;;  %v24_v15 = vld [vmem:[%s598_s0 + $0x68] sm:$0xff]  ;;  %v25_v17 = vld [vmem:[%s598_s0 + $0x70] sm:$0xff] }
   0x6   :  { %57 = vperm.xlu1 %438, %v20_v3   ;;  %54 = vperm.xlu0 %437, %v19_v4   ;;  %v15_v14 = vld [vmem:[%s598_s0 + $0x20] sm:$0xff]  ;;  %v16_v16 = vld [vmem:[%s598_s0 + $0x28] sm:$0xff]  ;;  %v17_v18 = vld [vmem:[%s598_s0 + $0x30] sm:$0xff] }
   0x7   :  { %398 = vmatpush3.msra.mxu0 %v127_v6  ;;  %432 = vmatpush3.msra.mxu1 %v127_v6  ;;  %v26_v19 = vld [vmem:[%s598_s0 + $0x78] sm:$0xff] }
   0x8   :  { %399 = vmatprep.subr.mxu0 %v126_v9  ;;  %429 = vmatprep.subr.mxu1 %v126_v9  ;;  %v18_v20 = vld [vmem:[%s598_s0 + $0x38] sm:$0xff] }
   0x9   :  { %400 = vmatpush3.msra.mxu0 %v126_v9  ;;  %433 = vmatpush3.msra.mxu1 %v126_v9 }
   0xa   :  { %60 = vperm.xlu1 %438, %v21_v7   ;;  %36 = vperm.xlu0 %437, %v13_v8  }
   0xb   :  { %401 = vmatprep.subr.mxu0 %v125_v12  ;;  %430 = vmatprep.subr.mxu1 %v125_v12 }
   0xc   :  { %402 = vmatpush3.msra.mxu0 %v125_v12  ;;  %434 = vmatpush3.msra.mxu1 %v125_v12 }
   0xe   :  { %63 = vperm.xlu1 %438, %v22_v10   ;;  %39 = vperm.xlu0 %437, %v14_v11  }
  0x12   :  { %66 = vperm.xlu1 %438, %v23_v13   ;;  %42 = vperm.xlu0 %437, %v15_v14  }
  0x16   :  { %69 = vperm.xlu1 %438, %v24_v15   ;;  %45 = vperm.xlu0 %437, %v16_v16  }
  0x1a   :  { %72 = vperm.xlu1 %438, %v25_v17   ;;  %48 = vperm.xlu0 %437, %v17_v18  }
  0x1e   :  { %75 = vperm.xlu1 %438, %v26_v19   ;;  %51 = vperm.xlu0 %437, %v18_v20  }
  0x7d   :  { %v34_v23 = vpop.permute.xlu1 %33  ;;  %v31_v24 = vpop.permute.xlu0 %30 }
  0x7e   :  { %vm78_vm1 = vcmp.eq.s32.totalorder %v34_v23, %v516_v22  ;;  %vm77_vm2 = vcmp.eq.s32.totalorder %v31_v24, %v516_v22 }
  0x7f   :  { %v344_v26 = vsel %vm78_vm1, 1.0, %v440_v25  ;;  %v343_v27 = vsel %vm77_vm2, 1.0, %v440_v25 }
  0x80   :  { %403 = vmatprep.mubr.msk.f32.mxu0 %vm129_vm0, %v343_v27 }
  0x81   :  { %v58_v28 = vpop.permute.xlu1 %57  ;;  %404 = vmatmul.mubr.msk.f32.vlgmr.msra.gmra.mxu0 %vm129_vm0, %v344_v26  ;;  %v55_v29 = vpop.permute.xlu0 %54 }
  0x82   :  { %vm86_vm3 = vcmp.eq.s32.totalorder %v58_v28, %v516_v22  ;;  %vm85_vm4 = vcmp.eq.s32.totalorder %v55_v29, %v516_v22 }
  0x83   :  { %v352_v30 = vsel %vm86_vm3, 1.0, %v440_v25  ;;  %v351_v31 = vsel %vm85_vm4, 1.0, %v440_v25 }
  0x84   :  { %415 = vmatprep.mubr.msk.f32.mxu1 %vm129_vm0, %v351_v31 }
  0x85   :  { %v61_v32 = vpop.permute.xlu1 %60  ;;  %416 = vmatmul.mubr.msk.f32.vlgmr.msra.gmra.mxu1 %vm129_vm0, %v352_v30  ;;  %v37_v33 = vpop.permute.xlu0 %36 }
  0x86   :  { %vm87_vm5 = vcmp.eq.s32.totalorder %v61_v32, %v516_v22  ;;  %vm79_vm6 = vcmp.eq.s32.totalorder %v37_v33, %v516_v22 }
  0x87   :  { %v353_v34 = vsel %vm87_vm5, 1.0, %v440_v25  ;;  %v345_v35 = vsel %vm79_vm6, 1.0, %v440_v25 }
  0x88   :  { %406 = vmatprep.mubr.msk.f32.mxu0 %vm129_vm0, %v345_v35  ;;  %418 = vmatprep.mubr.msk.f32.mxu1 %vm129_vm0, %v353_v34 }
  0x89   :  { %v64_v36 = vpop.permute.xlu1 %63  ;;  %v40_v37 = vpop.permute.xlu0 %39 }
  0x8a   :  { %vm88_vm7 = vcmp.eq.s32.totalorder %v64_v36, %v516_v22  ;;  %vm80_vm8 = vcmp.eq.s32.totalorder %v40_v37, %v516_v22 }
  0x8b   :  { %v354_v38 = vsel %vm88_vm7, 1.0, %v440_v25  ;;  %v346_v39 = vsel %vm80_vm8, 1.0, %v440_v25 }
  0x8c   :  { %407 = vmatmul.mubr.msk.f32.gmra.mxu0 %vm129_vm0, %v346_v39  ;;  %419 = vmatmul.mubr.msk.f32.gmra.mxu1 %vm129_vm0, %v354_v38 }
  0x8d   :  { %v67_v40 = vpop.permute.xlu1 %66  ;;  %v43_v41 = vpop.permute.xlu0 %42 }
  0x8e   :  { %vm89_vm9 = vcmp.eq.s32.totalorder %v67_v40, %v516_v22  ;;  %vm81_vm10 = vcmp.eq.s32.totalorder %v43_v41, %v516_v22 }
  0x8f   :  { %v355_v42 = vsel %vm89_vm9, 1.0, %v440_v25  ;;  %v347_v43 = vsel %vm81_vm10, 1.0, %v440_v25 }
  0x90   :  { %409 = vmatprep.mubr.msk.f32.mxu0 %vm129_vm0, %v347_v43  ;;  %421 = vmatprep.mubr.msk.f32.mxu1 %vm129_vm0, %v355_v42 }
  0x91   :  { %v70_v44 = vpop.permute.xlu1 %69  ;;  %v46_v45 = vpop.permute.xlu0 %45 }
  0x92   :  { %vm90_vm11 = vcmp.eq.s32.totalorder %v70_v44, %v516_v22  ;;  %vm82_vm12 = vcmp.eq.s32.totalorder %v46_v45, %v516_v22 }
  0x93   :  { %v356_v46 = vsel %vm90_vm11, 1.0, %v440_v25  ;;  %v348_v47 = vsel %vm82_vm12, 1.0, %v440_v25 }
  0x94   :  { %410 = vmatmul.mubr.msk.f32.gmra.mxu0 %vm129_vm0, %v348_v47  ;;  %422 = vmatmul.mubr.msk.f32.gmra.mxu1 %vm129_vm0, %v356_v46 }
  0x95   :  { %v73_v48 = vpop.permute.xlu1 %72  ;;  %v49_v49 = vpop.permute.xlu0 %48 }
  0x96   :  { %vm91_vm13 = vcmp.eq.s32.totalorder %v73_v48, %v516_v22  ;;  %vm83_vm14 = vcmp.eq.s32.totalorder %v49_v49, %v516_v22 }
  0x97   :  { %v357_v50 = vsel %vm91_vm13, 1.0, %v440_v25  ;;  %v349_v51 = vsel %vm83_vm14, 1.0, %v440_v25 }
  0x98   :  { %412 = vmatprep.mubr.msk.f32.mxu0 %vm129_vm0, %v349_v51  ;;  %424 = vmatprep.mubr.msk.f32.mxu1 %vm129_vm0, %v357_v50 }
  0x99   :  { %v76_v52 = vpop.permute.xlu1 %75  ;;  %v52_v53 = vpop.permute.xlu0 %51 }
  0x9a   :  { %vm92_vm15 = vcmp.eq.s32.totalorder %v76_v52, %v516_v22  ;;  %vm84_vm1 = vcmp.eq.s32.totalorder %v52_v53, %v516_v22 }
  0x9b   :  { %v358_v54 = vsel %vm92_vm15, 1.0, %v440_v25  ;;  %v350_v55 = vsel %vm84_vm1, 1.0, %v440_v25 }
  0x9c   :  { %413 = vmatmul.mubr.msk.f32.gmra.mxu0 %vm129_vm0, %v350_v55  ;;  %425 = vmatmul.mubr.msk.f32.gmra.mxu1 %vm129_vm0, %v358_v54 }
 0x141   :  { %v405_v56 = vpop.f32.mrf.mxu0 }
 0x142   :  { %324 = vst [vmem:[%s600_s2 + $0x8] sm:$0xff] %v405_v56 }
 0x143   :  { %v244_v57 = vpop.f32.mrf.mxu0 }
 0x144   :  { %323 = vst [vmem:[%s600_s2] sm:$0xff] %v244_v57 }
 0x145   :  { %v417_v58 = vpop.f32.mrf.mxu1 }
 0x146   :  { %332 = vst [vmem:[%s600_s2 + $0x48] sm:$0xff] %v417_v58 }
 0x147   :  { %v284_v59 = vpop.f32.mrf.mxu1 }
 0x148   :  { %331 = vst [vmem:[%s600_s2 + $0x40] sm:$0xff] %v284_v59 }
 0x14c   :  { %v408_v60 = vpop.f32.mrf.mxu0  ;;  %v420_v61 = vpop.f32.mrf.mxu1 }
 0x14d   :  { %326 = vst [vmem:[%s600_s2 + $0x18] sm:$0xff] %v408_v60  ;;  %334 = vst [vmem:[%s600_s2 + $0x58] sm:$0xff] %v420_v61 }
 0x14e   :  { %v254_v62 = vpop.f32.mrf.mxu0  ;;  %v294_v63 = vpop.f32.mrf.mxu1 }
 0x14f   :  { %325 = vst [vmem:[%s600_s2 + $0x10] sm:$0xff] %v254_v62  ;;  %333 = vst [vmem:[%s600_s2 + $0x50] sm:$0xff] %v294_v63 }
 0x154   :  { %v411_v0 = vpop.f32.mrf.mxu0  ;;  %v423_v1 = vpop.f32.mrf.mxu1 }
 0x155   :  { %328 = vst [vmem:[%s600_s2 + $0x28] sm:$0xff] %v411_v0  ;;  %336 = vst [vmem:[%s600_s2 + $0x68] sm:$0xff] %v423_v1 }
 0x156   :  { %v264_v2 = vpop.f32.mrf.mxu0  ;;  %v304_v3 = vpop.f32.mrf.mxu1 }
 0x157   :  { %327 = vst [vmem:[%s600_s2 + $0x20] sm:$0xff] %v264_v2  ;;  %335 = vst [vmem:[%s600_s2 + $0x60] sm:$0xff] %v304_v3 }
 0x15c   :  { %v414_v4 = vpop.f32.mrf.mxu0  ;;  %v426_v5 = vpop.f32.mrf.mxu1 }
 0x15d   :  { %330 = vst [vmem:[%s600_s2 + $0x38] sm:$0xff] %v414_v4  ;;  %338 = vst [vmem:[%s600_s2 + $0x78] sm:$0xff] %v426_v5 }
 0x15e   :  { %v274_v6 = vpop.f32.mrf.mxu0  ;;  %v314_v7 = vpop.f32.mrf.mxu1 }
 0x15f   :  { %329 = vst [vmem:[%s600_s2 + $0x30] sm:$0xff] %v274_v6  ;;  %337 = vst [vmem:[%s600_s2 + $0x70] sm:$0xff] %v314_v7 }

</bundles_post_ra>
